<compile_context>
chip_gen: v7x
topology: tpu7x:2x2x1
jax: 0.10.0
libtpu: 0.0.40
codegen_flags: <defaults>
</compile_context>

<pallas_src>
import jax
import jax.numpy as jnp
from jax.experimental import pallas as pl
from jax.experimental.pallas import tpu as pltpu


def _round_up(a, m):
    return ((a + m - 1) // m) * m


def _mlp_kernel(x_ref, w1_ref, w2_ref, w3_ref, w4t_ref, b_ref, o_ref):
    """Fused 4-layer MLP in (features, batch) layout.

    x_ref   : (2, T)              input, batch on the lane axis
    w1_ref  : (NN, 2)             PyTorch (out, in) layout, f32
    w2_ref  : (NN/2, NN)          f32 or bf16 (MXU operand)
    w3_ref  : (NN/2, NN/2)        f32 or bf16 (MXU operand)
    w4t_ref : (NN/2, 1)           output-layer weight, pre-transposed, f32
    b_ref   : (nb, 1)             packed biases, 8-row-aligned segments
    o_ref   : (1, T)
    """
    n1 = w1_ref.shape[0]          # NN
    n2 = w2_ref.shape[0]          # NN/2
    n3 = w3_ref.shape[0]          # NN/2

    # Sublane-aligned (multiple-of-8) segment offsets -> zero-cost views.
    o1 = 0
    o2 = _round_up(n1, 8)
    o3 = o2 + _round_up(n2, 8)
    o4 = o3 + _round_up(n3, 8)

    x = x_ref[...]                # (2, T) f32
    b = b_ref[...]                # (nb, 1) f32
    b1 = b[o1:o1 + n1, :]
    b2 = b[o2:o2 + n2, :]
    b3 = b[o3:o3 + n3, :]
    b4 = b[o4:o4 + 1, :]

    # Layer 1: contraction depth K=2 -> two VPU broadcast-FMAs (skip the MXU).
    w1 = w1_ref[...]                                      # (NN, 2)
    h1 = jnp.tanh(w1[:, 0:1] * x[0:1, :]
                  + w1[:, 1:2] * x[1:2, :]
                  + b1)                                   # (NN, T) f32

    # Hidden layers: MXU matmuls with f32 accumulation.  Operand dtype follows
    # the weights (f32 default; bf16 when mxu_bf16=True in the wrapper).
    w2 = w2_ref[...]
    w3 = w3_ref[...]
    h2 = jnp.tanh(
        jnp.dot(w2, h1.astype(w2.dtype), preferred_element_type=jnp.float32)
        + b2
    )                                                     # (NN/2, T) f32
    h3 = jnp.tanh(
        jnp.dot(w3, h2.astype(w3.dtype), preferred_element_type=jnp.float32)
        + b3
    )                                                     # (NN/2, T) f32

    # Output layer: single output feature -> VPU mul + XLU sublane reduce.
    out = jnp.sum(w4t_ref[...] * h3, axis=0, keepdims=True) + b4   # (1, T)

    o_ref[...] = out.astype(o_ref.dtype)


def net_forward(x, params, *, batch_tile=8192, mxu_bf16=False,
                x_transposed=False):
    """Fused Pallas forward pass.

    x: (B, 2) -> (B, 1)  (PyTorch Net semantics), or (2, B) -> (B, 1) when
    x_transposed=True (skips the wrapper-side transpose HBM pass entirely).
    `params` holds PyTorch-layout tensors: weights (out_features, in_features),
    biases (out_features,).  Any batch size B is accepted (padded internally).
    """
    (w1, b1), (w2, b2), (w3, b3), (w4, b4) = params
    if x_transposed:
        in_dim, B = x.shape
    else:
        B, in_dim = x.shape
    assert in_dim == 2 and w1.shape[1] == 2

    n1, n2, n3 = w1.shape[0], w2.shape[0], w3.shape[0]

    # ---- batch tiling --------------------------------------------------
    lanes = _round_up(B, 128)
    max_tile = max(128, (batch_tile // 128) * 128)

    # Cap the tile so the per-step working set (double-buffered in/out blocks
    # + f32 activations) stays well inside every generation's default scoped
    # VMEM budget (v5e: 16 MiB), so no vmem_limit_bytes override is needed.
    bytes_per_lane = 4 * (2 * 8 + 2 * 8
                          + _round_up(n1, 8)
                          + 2 * _round_up(n2, 8)
                          + 2 * _round_up(n3, 8))
    vmem_budget = 12 * 1024 * 1024
    vmem_tile = max(128, (vmem_budget // max(bytes_per_lane, 1)) // 128 * 128)
    max_tile = min(max_tile, vmem_tile)

    n_steps = -(-lanes // max_tile)
    # v7x has 2 TensorCores: keep at least 2 (even) "parallel" grid steps when
    # there is enough work so both cores are used.  Harmless on v5e/v6e.
    if lanes >= 2 * 1024:
        n_steps = max(n_steps, 2)
    if n_steps > 1 and n_steps % 2:
        n_steps += 1
    tile = _round_up(-(-lanes // n_steps), 128)
    B_pad = n_steps * tile

    # ---- operand prep ---------------------------------------------------
    xt = x if x_transposed else x.T                       # (2, B)
    if B_pad != B:
        xt = jnp.pad(xt, ((0, 0), (0, B_pad - B)))

    w2c = w2.astype(jnp.bfloat16) if mxu_bf16 else w2
    w3c = w3.astype(jnp.bfloat16) if mxu_bf16 else w3
    w4t = w4.T                                            # (NN/2, 1)

    # Pack biases at sublane-aligned (multiple-of-8 row) offsets.
    def _seg(bvec, rows):
        return jnp.pad(bvec, (0, rows - bvec.shape[0]))
    b_packed = jnp.concatenate([
        _seg(b1, _round_up(n1, 8)),
        _seg(b2, _round_up(n2, 8)),
        _seg(b3, _round_up(n3, 8)),
        _seg(b4, 8),
    ]).reshape(-1, 1)

    def full_spec(arr):
        nd = arr.ndim
        return pl.BlockSpec(arr.shape, lambda i, _nd=nd: (0,) * _nd)

    # Advisory cost estimate for XLA's scheduler.
    flops = 2 * B_pad * (2 * n1 + n1 * n2 + n2 * n3 + n3)
    transcendentals = B_pad * (n1 + n2 + n3)
    bytes_accessed = 4 * B_pad * 3 + 4 * int(
        w1.size + w2.size + w3.size + w4.size + b_packed.size)
    cost = pl.CostEstimate(flops=int(flops),
                           transcendentals=int(transcendentals),
                           bytes_accessed=int(bytes_accessed))

    out_t = pl.pallas_call(
        _mlp_kernel,
        out_shape=jax.ShapeDtypeStruct((1, B_pad), jnp.float32),
        grid_spec=pltpu.PrefetchScalarGridSpec(
            num_scalar_prefetch=0,
            grid=(n_steps,),
            in_specs=[
                pl.BlockSpec((2, tile), lambda i: (0, i)),
                full_spec(w1),
                full_spec(w2c),
                full_spec(w3c),
                full_spec(w4t),
                full_spec(b_packed),
            ],
            out_specs=pl.BlockSpec((1, tile), lambda i: (0, i)),
        ),
        compiler_params=pltpu.CompilerParams(
            dimension_semantics=("parallel",),
        ),
        cost_estimate=cost,
    )(xt, w1, w2c, w3c, w4t, b_packed)

    return out_t[:, :B].T                                 # (B, 1)


def init_params(key, NN):
    """PyTorch nn.Linear-style init: U(-1/sqrt(fan_in), 1/sqrt(fan_in)).

    Weights stored as (out_features, in_features); biases as (out_features,).
    """
    dims = [(2, NN), (NN, NN // 2), (NN // 2, NN // 2), (NN // 2, 1)]
    params = []
    for fan_in, fan_out in dims:
        key, kw, kb = jax.random.split(key, 3)
        bound = 1.0 / (fan_in ** 0.5)
        w = jax.random.uniform(kw, (fan_out, fan_in), jnp.float32, -bound, bound)
        b = jax.random.uniform(kb, (fan_out,), jnp.float32, -bound, bound)
        params.append((w, b))
    return params


def net_forward_ref(x, params):
    """Pure-JAX reference (matches PyTorch nn.Linear: y = x @ W.T + b)."""
    (w1, b1), (w2, b2), (w3, b3), (w4, b4) = params
    h = jnp.tanh(x @ w1.T + b1)
    h = jnp.tanh(h @ w2.T + b2)
    h = jnp.tanh(h @ w3.T + b3)
    return h @ w4.T + b4


if __name__ == "__main__":
    NN = 32          # hidden width, as in Net(NN)

    key = jax.random.PRNGKey(0)
    key, kx1, kx2 = jax.random.split(key, 3)
    params = init_params(key, NN)

    # Small batch: single grid step.
    B1 = 128
    x1 = jax.random.uniform(kx1, (B1, 2), jnp.float32, -1.0, 1.0)
    out1 = jax.block_until_ready(net_forward(x1, params))
    ref1 = net_forward_ref(x1, params)
    assert out1.shape == (B1, 1)
    assert jnp.allclose(out1, ref1, atol=1e-5, rtol=1e-5), "mismatch (B=128)"

    # Larger, non-tile-multiple batch: exercises padding + 2-step "parallel"
    # grid (megacore sharding path on v7x).
    B2 = 2100
    x2 = jax.random.uniform(kx2, (B2, 2), jnp.float32, -1.0, 1.0)
    out2 = jax.block_until_ready(net_forward(x2, params))
    ref2 = net_forward_ref(x2, params)
    assert out2.shape == (B2, 1)
    assert jnp.allclose(out2, ref2, atol=1e-5, rtol=1e-5), "mismatch (B=2100)"

    print("KERNEL_OK")
</pallas_src>

<mosaic_0001>
module attributes {stable_mosaic.version = 11 : i64} {
  func.func @_mlp_kernel(%arg0: i32, %arg1: memref<2x128xf32, #tpu.memory_space<vmem>>, %arg2: memref<32x2xf32, #tpu.memory_space<vmem>>, %arg3: memref<16x32xf32, #tpu.memory_space<vmem>>, %arg4: memref<16x16xf32, #tpu.memory_space<vmem>>, %arg5: memref<16x1xf32, #tpu.memory_space<vmem>>, %arg6: memref<72x1xf32, #tpu.memory_space<vmem>>, %arg7: memref<1x128xf32, #tpu.memory_space<vmem>>) attributes {dimension_semantics = [#tpu.dimension_semantics<parallel>], iteration_bounds = array<i64: 1>, scalar_prefetch = 0 : i64, scratch_operands = 0 : i64, tpu.core_type = #tpu.core_type<tc>, window_params = [{transform_indices = @transform_0, window_bounds = array<i64: 2, 128>}, {pipeline_mode = #tpu.pipeline_mode<synchronous>, transform_indices = @transform_1, window_bounds = array<i64: 32, 2>}, {pipeline_mode = #tpu.pipeline_mode<synchronous>, transform_indices = @transform_2, window_bounds = array<i64: 16, 32>}, {pipeline_mode = #tpu.pipeline_mode<synchronous>, transform_indices = @transform_3, window_bounds = array<i64: 16, 16>}, {pipeline_mode = #tpu.pipeline_mode<synchronous>, transform_indices = @transform_4, window_bounds = array<i64: 16, 1>}, {pipeline_mode = #tpu.pipeline_mode<synchronous>, transform_indices = @transform_5, window_bounds = array<i64: 72, 1>}, {transform_indices = @transform_6, window_bounds = array<i64: 1, 128>}]} {
    %c0 = arith.constant 0 : index
    %c0_0 = arith.constant 0 : index
    %0 = vector.load %arg1[%c0, %c0_0] : memref<2x128xf32, #tpu.memory_space<vmem>>, vector<2x128xf32>
    %c0_1 = arith.constant 0 : index
    %c0_2 = arith.constant 0 : index
    %1 = vector.load %arg6[%c0_1, %c0_2] : memref<72x1xf32, #tpu.memory_space<vmem>>, vector<72x1xf32>
    %2 = vector.extract_strided_slice %1 {offsets = [0, 0], sizes = [32, 1], strides = [1, 1]} : vector<72x1xf32> to vector<32x1xf32>
    %3 = vector.extract_strided_slice %1 {offsets = [32, 0], sizes = [16, 1], strides = [1, 1]} : vector<72x1xf32> to vector<16x1xf32>
    %4 = vector.extract_strided_slice %1 {offsets = [48, 0], sizes = [16, 1], strides = [1, 1]} : vector<72x1xf32> to vector<16x1xf32>
    %5 = vector.extract_strided_slice %1 {offsets = [64, 0], sizes = [1, 1], strides = [1, 1]} : vector<72x1xf32> to vector<1x1xf32>
    %c0_3 = arith.constant 0 : index
    %c0_4 = arith.constant 0 : index
    %6 = vector.load %arg2[%c0_3, %c0_4] : memref<32x2xf32, #tpu.memory_space<vmem>>, vector<32x2xf32>
    %7 = vector.extract_strided_slice %6 {offsets = [0, 0], sizes = [32, 1], strides = [1, 1]} : vector<32x2xf32> to vector<32x1xf32>
    %8 = vector.extract_strided_slice %0 {offsets = [0, 0], sizes = [1, 128], strides = [1, 1]} : vector<2x128xf32> to vector<1x128xf32>
    %9 = vector.broadcast %7 : vector<32x1xf32> to vector<32x128xf32>
    %10 = vector.broadcast %8 : vector<1x128xf32> to vector<32x128xf32>
    %11 = arith.mulf %9, %10 : vector<32x128xf32>
    %12 = vector.extract_strided_slice %6 {offsets = [0, 1], sizes = [32, 1], strides = [1, 1]} : vector<32x2xf32> to vector<32x1xf32>
    %13 = vector.extract_strided_slice %0 {offsets = [1, 0], sizes = [1, 128], strides = [1, 1]} : vector<2x128xf32> to vector<1x128xf32>
    %14 = vector.broadcast %12 : vector<32x1xf32> to vector<32x128xf32>
    %15 = vector.broadcast %13 : vector<1x128xf32> to vector<32x128xf32>
    %16 = arith.mulf %14, %15 : vector<32x128xf32>
    %17 = arith.addf %11, %16 : vector<32x128xf32>
    %18 = vector.broadcast %2 : vector<32x1xf32> to vector<32x128xf32>
    %19 = arith.addf %17, %18 : vector<32x128xf32>
    %20 = math.tanh %19 : vector<32x128xf32>
    %c0_5 = arith.constant 0 : index
    %c0_6 = arith.constant 0 : index
    %21 = vector.load %arg3[%c0_5, %c0_6] : memref<16x32xf32, #tpu.memory_space<vmem>>, vector<16x32xf32>
    %c0_7 = arith.constant 0 : index
    %c0_8 = arith.constant 0 : index
    %22 = vector.load %arg4[%c0_7, %c0_8] : memref<16x16xf32, #tpu.memory_space<vmem>>, vector<16x16xf32>
    %cst = arith.constant dense<0.000000e+00> : vector<16x128xf32>
    %23 = tpu.matmul %21, %20, %cst {dimension_numbers = #tpu.dot_dimension_numbers<[1], [0], [0], [1], [0, 0, 1, 1], [], []>} : vector<16x32xf32>, vector<32x128xf32>, vector<16x128xf32> -> vector<16x128xf32>
    %24 = vector.broadcast %3 : vector<16x1xf32> to vector<16x128xf32>
    %25 = arith.addf %23, %24 : vector<16x128xf32>
    %26 = math.tanh %25 : vector<16x128xf32>
    %cst_9 = arith.constant dense<0.000000e+00> : vector<16x128xf32>
    %27 = tpu.matmul %22, %26, %cst_9 {dimension_numbers = #tpu.dot_dimension_numbers<[1], [0], [0], [1], [0, 0, 1, 1], [], []>} : vector<16x16xf32>, vector<16x128xf32>, vector<16x128xf32> -> vector<16x128xf32>
    %28 = vector.broadcast %4 : vector<16x1xf32> to vector<16x128xf32>
    %29 = arith.addf %27, %28 : vector<16x128xf32>
    %30 = math.tanh %29 : vector<16x128xf32>
    %c0_10 = arith.constant 0 : index
    %c0_11 = arith.constant 0 : index
    %31 = vector.load %arg5[%c0_10, %c0_11] : memref<16x1xf32, #tpu.memory_space<vmem>>, vector<16x1xf32>
    %32 = vector.broadcast %31 : vector<16x1xf32> to vector<16x128xf32>
    %33 = arith.mulf %32, %30 : vector<16x128xf32>
    %cst_12 = arith.constant dense<0.000000e+00> : vector<128xf32>
    %34 = vector.multi_reduction <add>, %33, %cst_12 [0] : vector<16x128xf32> to vector<128xf32>
    %35 = vector.shape_cast %34 : vector<128xf32> to vector<1x128xf32>
    %36 = vector.broadcast %5 : vector<1x1xf32> to vector<1x128xf32>
    %37 = arith.addf %35, %36 : vector<1x128xf32>
    %c0_13 = arith.constant 0 : index
    %c0_14 = arith.constant 0 : index
    %38 = vector.load %arg7[%c0_13, %c0_14] : memref<1x128xf32, #tpu.memory_space<vmem>>, vector<1x128xf32>
    tpu.vector_store %arg7[%c0_13, %c0_14], %37 {strides = array<i32>} : memref<1x128xf32, #tpu.memory_space<vmem>>, vector<1x128xf32>,
    return
  }
  func.func @transform_0(%arg0: i32) -> (i32, i32) {
    %c0_i32 = arith.constant 0 : i32
    %c0_i32_0 = arith.constant 0 : i32
    return %c0_i32, %arg0 : i32, i32
  }
  func.func @transform_1(%arg0: i32) -> (i32, i32) {
    %c0_i32 = arith.constant 0 : i32
    %c0_i32_0 = arith.constant 0 : i32
    %c0_i32_1 = arith.constant 0 : i32
    return %c0_i32, %c0_i32_0 : i32, i32
  }
  func.func @transform_2(%arg0: i32) -> (i32, i32) {
    %c0_i32 = arith.constant 0 : i32
    %c0_i32_0 = arith.constant 0 : i32
    %c0_i32_1 = arith.constant 0 : i32
    return %c0_i32, %c0_i32_0 : i32, i32
  }
  func.func @transform_3(%arg0: i32) -> (i32, i32) {
    %c0_i32 = arith.constant 0 : i32
    %c0_i32_0 = arith.constant 0 : i32
    %c0_i32_1 = arith.constant 0 : i32
    return %c0_i32, %c0_i32_0 : i32, i32
  }
  func.func @transform_4(%arg0: i32) -> (i32, i32) {
    %c0_i32 = arith.constant 0 : i32
    %c0_i32_0 = arith.constant 0 : i32
    %c0_i32_1 = arith.constant 0 : i32
    return %c0_i32, %c0_i32_0 : i32, i32
  }
  func.func @transform_5(%arg0: i32) -> (i32, i32) {
    %c0_i32 = arith.constant 0 : i32
    %c0_i32_0 = arith.constant 0 : i32
    %c0_i32_1 = arith.constant 0 : i32
    return %c0_i32, %c0_i32_0 : i32, i32
  }
  func.func @transform_6(%arg0: i32) -> (i32, i32) {
    %c0_i32 = arith.constant 0 : i32
    %c0_i32_0 = arith.constant 0 : i32
    return %c0_i32, %arg0 : i32, i32
  }
}

</mosaic_0001>

<bundles_post_ra>
// kernel: tpu_custom_call.1
= control target key start
LH: loop header
LB: loop body
LE: loop exit
PB: predicated region body
PF: predicated region fallthrough
CT: control target
= control target key end

     0   :  { %v449_v2 = vmov 1   ;;  %s563_s0 = inlined_call_operand.vmem [shape: f32[2,128], index: 0, kind: input, shape index: {}]   ;;  %s564_s1 = inlined_call_operand.vmem [shape: f32[32,2], index: 1, kind: input, shape index: {}]   ;;  %s565_s2 = inlined_call_operand.vmem [shape: f32[16,32], index: 2, kind: input, shape index: {}]   ;;  %s566_s3 = inlined_call_operand.vmem [shape: f32[16,16], index: 3, kind: input, shape index: {}]   ;;  %s567_s4 = inlined_call_operand.vmem [shape: f32[16,1], index: 4, kind: input, shape index: {}]   ;;  %s568_s5 = inlined_call_operand.vmem [shape: f32[72,1], index: 5, kind: input, shape index: {}]   ;;  %s569_s6 = inlined_call_operand.hbm [shape: f32[1,128], index: 6, kind: output, shape index: {}]  }
   0x1   :  { %v36_v0 = vld [vmem:[%s564_s1 + $0x10] sm:$0xff]  ;;  %v34_v1 = vld [vmem:[%s564_s1] sm:$0xff]  ;;  %405 = vset.pattern.permute.xlu0 %v449_v2  ;;  %403 = vset.pattern.permute.xlu1 %v449_v2  ;;  %v35_v3 = vld [vmem:[%s564_s1 + $0x8] sm:$0xff] }
   0x2   :  { %75 = vperm.xlu0 %405, %v36_v0   ;;  %67 = vperm.xlu1 %403, %v34_v1  }
   0x3   :  { %11 = vsyncpa [#allocation3], 0  ;;  %v450_v4 = vmov 0   ;;  %v37_v5 = vld [vmem:[%s564_s1 + $0x18] sm:$0xff]  ;;  %v26_v6 = vld [vmem:[%s568_s5 + $0x8] sm:$0xff]  ;;  %vm136_vm0 = vcmask 261120   ;;  %v58_v18 = vlaneseq }
   0x4   :  { %v25_v7 = vld [vmem:[%s568_s5] sm:$0xff]  ;;  %v27_v9 = vld [vmem:[%s568_s5 + $0x10] sm:$0xff]  ;;  %v28_v11 = vld [vmem:[%s568_s5 + $0x18] sm:$0xff]  ;;  %vm230_vm1 = vcmask 130048  }
   0x5   :  { %v29_v8 = vld [vmem:[%s568_s5 + $0x20] sm:$0xff]  ;;  %v31_v10 = vld [vmem:[%s568_s5 + $0x30] sm:$0xff]  ;;  %v30_v13 = vld [vmem:[%s568_s5 + $0x28] sm:$0xff]  ;;  %v59_v21 = vshrl.u32 %v58_v18, 7 }
   0x6   :  { %406 = vset.pattern.permute.xlu0 %v450_v4  ;;  %71 = vperm.xlu1 %403, %v35_v3   ;;  %v314_v12 = vld [vmem:[%s567_s4] sm:$0xff]  ;;  %v32_v15 = vld [vmem:[%s568_s5 + $0x38] sm:$0xff]  ;;  %v315_v16 = vld [vmem:[%s567_s4 + $0x8] sm:$0xff] }
   0x7   :  { %40 = vperm.xlu0 %406, %v34_v1   ;;  %v33_v14 = vld [vmem:[%s568_s5 + $0x40] sm:$0xff]  ;;  %v60_v24 = vsub.s32 0, %v59_v21  ;;  %v84_v25 = vsub.s32 1, %v59_v21  ;;  %v123_v59 = vld [vmem:[%s565_s2 + $0x8] sm:$0xff] }
   0x8   :  { %v122_v17 = vld [vmem:[%s565_s2] sm:$0xff] }
   0x9   :  { %378 = vmatprep.mubr.msk.f32.mxu0 %vm136_vm0, %v122_v17  ;;  %v24_v26 = vld [vmem:[%s563_s0] sm:$0x3] }
   0xa   :  { %404 = vset.pattern.permute.xlu1 %v450_v4  ;;  %v61_v29 = vrot.slane %v24_v26, %v60_v24  ;;  %v85_v30 = vrot.slane %v24_v26, %v84_v25  ;;  %v124_v60 = vld [vmem:[%s566_s3] sm:$0xff] }
   0xb   :  { %45 = vperm.xlu0 %406, %v35_v3   ;;  %55 = vperm.xlu1 %404, %v37_v5  }
   0xc   :  { %385 = vmatprep.mubr.msk.f32.mxu1 %vm230_vm1, %v124_v60 }
   0xf   :  { %50 = vperm.xlu0 %406, %v36_v0   ;;  %407 = vset.pattern.permute.xlu1 %v449_v2 }
  0x10   :  { %79 = vperm.xlu1 %407, %v37_v5  }
  0x13   :  { %101 = vperm.xlu0 %406, %v26_v6   ;;  %v125_v6 = vld [vmem:[%s566_s3 + $0x8] sm:$0xff]  ;;  %s451_s3 = smov [#allocation2]  }
  0x14   :  { %408 = vset.pattern.permute.xlu1 %v450_v4  ;;  %s348_s8 = sshll.u32 %s451_s3, 4  ;;  %s349_s8 = int_to_ptr.vmem [resolvable:$true] %s348_s8 }
  0x15   :  { %96 = vperm.xlu1 %408, %v25_v7   ;;  %s425_s9 = scalar_lea.vmem %s349_s8, 16  ;;  %s429_s10 = scalar_lea.vmem %s349_s8, 32 }
  0x16   :  { %p426_p0 = scmp.ne.s32.totalorder %s349_s8, %s425_s9  ;;  %p430_p1 = scmp.lt.s32.totalorder %s349_s8, %s349_s8 }
  0x17   :  { %128 = vperm.xlu0 %406, %v29_v8   ;;  %p431_p2 = scmp.lt.s32.totalorder %s429_s10, %s425_s9 }
  0x19   :  { %106 = vperm.xlu1 %408, %v27_v9   ;;  %p432_p3 = por %p431_p2, %p430_p1 }
  0x1b   :  { %222 = vperm.xlu0 %406, %v31_v10   ;;  %p433_p4 = pnand %p432_p3, %p426_p0 }
  0x1d   :  { %111 = vperm.xlu1 %408, %v28_v11  }
  0x1f   :  { %318 = vperm.xlu0 %406, %v314_v12  }
  0x21   :  { %133 = vperm.xlu1 %408, %v30_v13  }
  0x23   :  { %337 = vperm.xlu0 %406, %v33_v14  }
  0x25   :  { %227 = vperm.xlu1 %408, %v32_v15  }
  0x29   :  { %323 = vperm.xlu1 %408, %v315_v16  }
  0x81   :  { %v68_v19 = vpop.permute.xlu1 %67  ;;  %v76_v20 = vpop.permute.xlu0 %75 }
  0x82   :  { %v86_v36 = vmul.f32 %v85_v30, %v68_v19  ;;  %v88_v44 = vmul.f32 %v85_v30, %v76_v20 }
  0x85   :  { %v72_v22 = vpop.permute.xlu1 %71 }
  0x86   :  { %v41_v23 = vpop.permute.xlu0 %40  ;;  %v87_v33 = vmul.f32 %v85_v30, %v72_v22 }
  0x87   :  { %v62_v34 = vmul.f32 %v61_v29, %v41_v23 }
  0x89   :  { %v90_v40 = vadd.f32 %v86_v36, %v62_v34 }
  0x8a   :  { %v46_v27 = vpop.permute.xlu0 %45  ;;  %v56_v28 = vpop.permute.xlu1 %55 }
  0x8b   :  { %v63_v31 = vmul.f32 %v61_v29, %v46_v27  ;;  %v65_v48 = vmul.f32 %v61_v29, %v56_v28 }
  0x8d   :  { %v91_v37 = vadd.f32 %v87_v33, %v63_v31 }
  0x8e   :  { %v51_v32 = vpop.permute.xlu0 %50 }
  0x8f   :  { %v80_v35 = vpop.permute.xlu1 %79  ;;  %v64_v41 = vmul.f32 %v61_v29, %v51_v32 }
  0x90   :  { %v89_v45 = vmul.f32 %v85_v30, %v80_v35 }
  0x91   :  { %v92_v47 = vadd.f32 %v88_v44, %v64_v41 }
  0x92   :  { %v102_v38 = vpop.permute.xlu0 %101  ;;  %v93_v50 = vadd.f32 %v89_v45, %v65_v48 }
  0x93   :  { %v115_v39 = vadd.f32 %v102_v38, %v91_v37 }
  0x94   :  { %v97_v42 = vpop.permute.xlu1 %96 }
  0x95   :  { %v114_v43 = vadd.f32 %v97_v42, %v90_v40  ;;  %409 = vtanh.f32 %v115_v39 }
  0x96   :  { %v129_v63 = vpop.permute.xlu0 %128 }
  0x97   :  { %411 = vtanh.f32 %v114_v43 }
  0x98   :  { %v107_v46 = vpop.permute.xlu1 %106 }
  0x99   :  { %v116_v49 = vadd.f32 %v107_v46, %v92_v47 }
  0x9a   :  { %v223_v9 = vpop.permute.xlu0 %222 }
  0x9b   :  { %413 = vtanh.f32 %v116_v49 }
  0x9c   :  { %v112_v51 = vpop.permute.xlu1 %111 }
  0x9d   :  { %v117_v52 = vadd.f32 %v112_v51, %v93_v50 }
  0x9e   :  { %v319_v16 = vpop.permute.xlu0 %318 }
  0x9f   :  { %415 = vtanh.f32 %v117_v52  ;;  %v410_v53 = vpop.eup %409 }
  0xa0   :  { %v134_v61 = vpop.permute.xlu1 %133 }
  0xa1   :  { %v412_v54 = vpop.eup %411 }
  0xa2   :  { %v388_v55 = vpack.c.bf16 %v410_v53, %v412_v54  ;;  %v338_v26 = vpop.permute.xlu0 %337 }
  0xa4   :  { %389 = vmatprep.subr.bf16.mxu0 %v388_v55  ;;  %v228_v7 = vpop.permute.xlu1 %227 }
  0xa5   :  { %391 = vmatpush3.bf16.msra.mxu0 %v388_v55  ;;  %v414_v56 = vpop.eup %413 }
  0xa8   :  { %v324_v14 = vpop.permute.xlu1 %323 }
  0xa9   :  { %v416_v57 = vpop.eup %415 }
  0xaa   :  { %v392_v58 = vpack.c.bf16 %v416_v57, %v414_v56 }
  0xac   :  { %393 = vmatprep.subr.bf16.mxu0 %v392_v58 }
  0xad   :  { %395 = vmatpush3.bf16.msra.mxu0 %v392_v58 }
  0xb0   :  { %379 = vmatmul.mubr.msk.f32.vlgmr.msra.gmra.mrb[0].mxu0 %vm136_vm0, %v123_v59 }
 0x183   :  { %v380_v62 = vpop.f32.mrb[0].mxu0 }
 0x184   :  { %v215_v0 = vadd.f32 %v380_v62, %v134_v61  ;;  %v209_v1 = vpop.f32.mrb[1].mxu0 }
 0x185   :  { %v210_v2 = vadd.f32 %v209_v1, %v129_v63 }
 0x186   :  { %417 = vtanh.f32 %v215_v0 }
 0x187   :  { %419 = vtanh.f32 %v210_v2 }
 0x190   :  { %v418_v3 = vpop.eup %417 }
 0x191   :  { %v420_v4 = vpop.eup %419 }
 0x192   :  { %v396_v5 = vpack.c.bf16 %v418_v3, %v420_v4 }
 0x194   :  { %397 = vmatprep.subr.bf16.mxu1 %v396_v5 }
 0x195   :  { %399 = vmatpush3.bf16.msra.mxu1 %v396_v5 }
 0x198   :  { %386 = vmatmul.mubr.msk.f32.vlgmr.msra.gmra.mrb[0].mxu1 %vm230_vm1, %v125_v6 }
 0x26b   :  { %v387_v8 = vpop.f32.mrb[0].mxu1 }
 0x26c   :  { %v309_v10 = vadd.f32 %v387_v8, %v228_v7  ;;  %v303_v11 = vpop.f32.mrb[1].mxu1 }
 0x26d   :  { %v304_v12 = vadd.f32 %v303_v11, %v223_v9 }
 0x26e   :  { %421 = vtanh.f32 %v309_v10 }
 0x26f   :  { %423 = vtanh.f32 %v304_v12 }
 0x278   :  { %v422_v13 = vpop.eup %421 }
 0x279   :  { %v424_v15 = vpop.eup %423  ;;  %v327_v17 = vmul.f32 %v422_v13, %v324_v14 }
 0x27a   :  { %v326_v18 = vmul.f32 %v424_v15, %v319_v16 }
 0x27c   :  { %v328_v19 = vadd.f32 %v327_v17, %v326_v18 }
 0x27e   :  { %v329_v20 = vrot.slane %v328_v19, 4 }
 0x280   :  { %v330_v21 = vadd.f32 %v329_v20, %v328_v19 }
 0x282   :  { %v331_v22 = vrot.slane %v330_v21, 2 }
 0x284   :  { %v332_v23 = vadd.f32 %v331_v22, %v330_v21 }
 0x286   :  { %v333_v24 = vrot.slane %v332_v23, 1 }
 0x288   :  { %v334_v25 = vadd.f32 %v333_v24, %v332_v23 }
 0x28a   :  { %v340_v27 = vadd.f32 %v338_v26, %v334_v25 }
 0x28c   :  { %341 = vst [vmem:[#allocation2] sm:$0x1] %v340_v27 }
 0x28d   :  { %436 = shalt.err (!%p433_p4)
}
 0x28e   :  { %s437_s12 = scalar_lea.hbm %s569_s6, 16 }
 0x28f   :  { %p438_p5 = scmp.ne.s32.totalorder %s569_s6, %s437_s12  ;;  %p441_p6 = scmp.lt.u32.totalorder %s437_s12, %s569_s6 }
 0x291   :  { %p443_p7 = pnand %p441_p6, %p438_p5 }
 0x293   :  { %446 = shalt.err (!%p443_p7)
}
 0x294   :  { %351 = dma.vmem_to_hbm [thread:$0]  %s349_s8, 16, %s569_s6, [#allocation3]  }
 0x295   :  { %447 = dma.done.wait [#allocation3], 16  }
 0x296   :  { %448 = vsyncadd [#allocation3], 4294967280 }
 0x297   :  { %355 = vsyncpa [#allocation3], 1 }

</bundles_post_ra>
